<compile_context>
chip_gen: v7x
topology: tpu7x:2x2x1
jax: 0.10.0
libtpu: 0.0.40
codegen_flags: <defaults>
</compile_context>

<pallas_src>
import jax
import jax.numpy as jnp
from jax.experimental import pallas as pl
from jax.experimental.pallas import tpu as pltpu

_LANE = 128
_SUBLANE = 8
_MIN_TILE = _SUBLANE * _LANE          # 1024 elems: one (8,128) f32 tile
_SMALL_ELEMS = 512 * 1024             # <= 2 MiB f32 -> single-block path
_WIDE_LANES = 1024                    # lane-dense last dim for large inputs
_BLOCK_ROWS = 512                     # (512,1024) f32 block = 2 MiB per step


def _make_log_kernel(delta):
    def kernel(x_ref, o_ref):
        # Elementwise add (VPU) + log (EUP) on the whole VMEM tile.
        o_ref[...] = jnp.log(x_ref[...] + delta)
    return kernel


def log_pallas(x, delta=0.0):
    """log(x + delta), elementwise, same shape/dtype as x. Pallas TPU kernel."""
    orig_shape = x.shape
    dtype = x.dtype
    n = x.size
    delta = float(delta)

    if n == 0:
        return jnp.log(x + jnp.asarray(delta, dtype))

    itemsize = jnp.dtype(dtype).itemsize
    kernel = _make_log_kernel(delta)

    if n <= _SMALL_ELEMS:
        # Small path: pad only to one (8,128) tile; whole slab = one block.
        width = _LANE
        n_pad = pl.cdiv(n, _MIN_TILE) * _MIN_TILE
        rows = n_pad // width
        block_rows = rows
        grid = (1,)
    else:
        # Large path: wide, lane-dense blocks (~2 MiB f32/step). Pad only to a
        # multiple of 8*width (<= 32 KiB waste); the ragged last block is
        # handled by Pallas (out-of-bounds lanes masked on store).
        width = _WIDE_LANES
        n_pad = pl.cdiv(n, _SUBLANE * width) * (_SUBLANE * width)
        rows = n_pad // width
        block_rows = _BLOCK_ROWS
        grid = (pl.cdiv(rows, block_rows),)

    x_flat = jnp.reshape(x, (-1,))
    if n_pad != n:
        # Pad with 1.0 so log() of the pad region stays finite; dropped below.
        x_flat = jnp.pad(x_flat, (0, n_pad - n), constant_values=1)
    x2d = jnp.reshape(x_flat, (rows, width))

    out2d = pl.pallas_call(
        kernel,
        out_shape=jax.ShapeDtypeStruct((rows, width), dtype),
        grid=grid,
        in_specs=[pl.BlockSpec((block_rows, width), lambda i: (i, 0))],
        out_specs=pl.BlockSpec((block_rows, width), lambda i: (i, 0)),
        compiler_params=pltpu.CompilerParams(
            dimension_semantics=("parallel",),
        ),
        cost_estimate=pl.CostEstimate(
            flops=n_pad,
            transcendentals=n_pad,
            bytes_accessed=2 * n_pad * itemsize,
        ),
    )(x2d)

    if n_pad != n:
        return jnp.reshape(jnp.reshape(out2d, (-1,))[:n], orig_shape)
    return jnp.reshape(out2d, orig_shape)


if __name__ == "__main__":
    key = jax.random.PRNGKey(0)
    k1, k2 = jax.random.split(key)

    # Small NCHW feature map (module-sized demo); strictly positive so log is
    # well-defined, matching typical usage of Log after non-negative outputs.
    x = jax.random.uniform(
        k1, (2, 4, 16, 16), dtype=jnp.float32, minval=0.1, maxval=2.0
    )
    delta = 0.0  # module default

    out = log_pallas(x, delta=delta)
    out = jax.block_until_ready(out)
    ref = jnp.log(x + delta)
    assert out.shape == x.shape and out.dtype == x.dtype
    assert jnp.allclose(out, ref, atol=1e-6, rtol=1e-6)

    # Second check: medium input exercises the wide-block path (incl. ragged
    # final block) while staying tiny in absolute terms (~3 MiB).
    x2 = jax.random.uniform(
        k2, (1024, 768), dtype=jnp.float32, minval=0.05, maxval=3.0
    )
    out2 = jax.block_until_ready(log_pallas(x2, delta=0.5))
    ref2 = jnp.log(x2 + 0.5)
    assert out2.shape == x2.shape and out2.dtype == x2.dtype
    assert jnp.allclose(out2, ref2, atol=1e-6, rtol=1e-6)

    print("KERNEL_OK")
</pallas_src>

<mosaic_0001>
module attributes {stable_mosaic.version = 11 : i64} {
  func.func @kernel(%arg0: i32, %arg1: memref<16x128xf32, #tpu.memory_space<vmem>>, %arg2: memref<16x128xf32, #tpu.memory_space<vmem>>) attributes {dimension_semantics = [#tpu.dimension_semantics<parallel>], iteration_bounds = array<i64: 1>, scalar_prefetch = 0 : i64, scratch_operands = 0 : i64, tpu.core_type = #tpu.core_type<tc>, window_params = [{transform_indices = @transform_0, window_bounds = array<i64: 16, 128>}, {transform_indices = @transform_1, window_bounds = array<i64: 16, 128>}]} {
    %c0 = arith.constant 0 : index
    %c0_0 = arith.constant 0 : index
    %0 = vector.load %arg1[%c0, %c0_0] : memref<16x128xf32, #tpu.memory_space<vmem>>, vector<16x128xf32>
    %cst = arith.constant 0.000000e+00 : f32
    %1 = vector.broadcast %cst : f32 to vector<16x128xf32>
    %2 = arith.addf %0, %1 : vector<16x128xf32>
    %3 = math.log %2 : vector<16x128xf32>
    %c0_1 = arith.constant 0 : index
    %c0_2 = arith.constant 0 : index
    %4 = vector.load %arg2[%c0_1, %c0_2] : memref<16x128xf32, #tpu.memory_space<vmem>>, vector<16x128xf32>
    tpu.vector_store %arg2[%c0_1, %c0_2], %3 {strides = array<i32>} : memref<16x128xf32, #tpu.memory_space<vmem>>, vector<16x128xf32>,
    return
  }
  func.func @transform_0(%arg0: i32) -> (i32, i32) {
    %c0_i32 = arith.constant 0 : i32
    %c0_i32_0 = arith.constant 0 : i32
    return %arg0, %c0_i32 : i32, i32
  }
  func.func @transform_1(%arg0: i32) -> (i32, i32) {
    %c0_i32 = arith.constant 0 : i32
    %c0_i32_0 = arith.constant 0 : i32
    return %arg0, %c0_i32 : i32, i32
  }
}

</mosaic_0001>

<bundles_post_ra>
// kernel: tpu_custom_call.1
= control target key start
LH: loop header
LB: loop body
LE: loop exit
PB: predicated region body
PF: predicated region fallthrough
CT: control target
= control target key end

     0   :  { %6 = vsyncpa [#allocation3], 0  ;;  %s150_s0 = inlined_call_operand.hbm [shape: f32[16,128], index: 0, kind: input, shape index: {}]   ;;  %s151_s1 = inlined_call_operand.hbm [shape: f32[16,128], index: 1, kind: output, shape index: {}]  }
   0x1   :  { %7 = vsyncpa [#allocation4], 0  ;;  %s106_s6 = smov [#allocation2]   ;;  %s58_s10 = scalar_lea.hbm %s150_s0, 256 }
   0x2   :  { %s13_s7 = sshll.u32 %s106_s6, 4  ;;  %p59_p0 = scmp.ne.s32.totalorder %s150_s0, %s58_s10  ;;  %s14_s7 = int_to_ptr.vmem [resolvable:$true] %s13_s7 }
   0x3   :  { %p62_p1 = scmp.lt.u32.totalorder %s58_s10, %s150_s0 }
   0x5   :  { %p64_p2 = pnand %p62_p1, %p59_p0 }
   0x7   :  { %67 = shalt.err (!%p64_p2)
}
   0x8   :  { %s68_s15 = scalar_lea.vmem %s14_s7, 256  ;;  %p73_p4 = scmp.lt.s32.totalorder %s14_s7, %s14_s7 }
   0x9   :  { %p69_p3 = scmp.ne.s32.totalorder %s14_s7, %s68_s15  ;;  %p74_p5 = scmp.lt.s32.totalorder %s68_s15, %s68_s15 }
   0xb   :  { %p75_p6 = por %p74_p5, %p73_p4 }
   0xd   :  { %p76_p7 = pnand %p75_p6, %p69_p3 }
   0xf   :  { %79 = shalt.err (!%p76_p7)
}
  0x10   :  { %s107_s16 = smov 128   ;;  %s108_s17 = smov 8  }
  0x11   :  { %19 = dma.hbm_to_vmem [thread:$0]  %s150_s0, 256, %s14_s7, [#allocation3], %s107_s16, %s107_s16, %s108_s17  }
  0x12   :  { %102 = dma.done.wait [#allocation3], 256  }
  0x13   :  { %103 = vsyncadd [#allocation3], 4294967040  ;;  %v23_v0 = vld [vmem:[#allocation2] sm:$0xff]  ;;  %v24_v1 = vld [vmem:[#allocation2 + $0x8] sm:$0xff]  ;;  %s109_s20 = smov [#allocation5]  }
  0x14   :  { %54 = vlog2.f32 %v23_v0  ;;  %s38_s21 = sshll.u32 %s109_s20, 4  ;;  %s39_s21 = int_to_ptr.vmem [resolvable:$true] %s38_s21 }
  0x15   :  { %56 = vlog2.f32 %v24_v1  ;;  %s80_s22 = scalar_lea.vmem %s39_s21, 256  ;;  %p85_p9 = scmp.lt.s32.totalorder %s39_s21, %s39_s21 }
  0x16   :  { %p81_p8 = scmp.ne.s32.totalorder %s39_s21, %s80_s22  ;;  %p86_p10 = scmp.lt.s32.totalorder %s80_s22, %s80_s22 }
  0x18   :  { %p87_p11 = por %p86_p10, %p85_p9 }
  0x1a   :  { %p88_p12 = pnand %p87_p11, %p81_p8 }
  0x1e   :  { %v55_v2 = vpop.eup %54 }
  0x1f   :  { %v57_v3 = vpop.eup %56  ;;  %v28_v4 = vmul.f32 0.6931472, %v55_v2 }
  0x20   :  { %v30_v5 = vmul.f32 0.6931472, %v57_v3 }
  0x21   :  { %31 = vst [vmem:[#allocation5] sm:$0xff] %v28_v4 }
  0x22   :  { %32 = vst [vmem:[#allocation5 + $0x8] sm:$0xff] %v30_v5 }
  0x23   :  { %91 = shalt.err (!%p88_p12)
}
  0x24   :  { %s92_s24 = scalar_lea.hbm %s151_s1, 256 }
  0x25   :  { %p93_p13 = scmp.ne.s32.totalorder %s151_s1, %s92_s24  ;;  %p96_p0 = scmp.lt.u32.totalorder %s92_s24, %s151_s1 }
  0x27   :  { %p98_p1 = pnand %p96_p0, %p93_p13 }
  0x29   :  { %101 = shalt.err (!%p98_p1)
}
  0x2a   :  { %44 = dma.vmem_to_hbm [thread:$0]  %s39_s21, 256, %s151_s1, [#allocation4], %s107_s16, %s107_s16, %s108_s17  }
  0x2b   :  { %104 = dma.done.wait [#allocation4], 256  }
  0x2c   :  { %105 = vsyncadd [#allocation4], 4294967040 }
  0x2d   :  { %48 = vsyncpa [#allocation3], 1 }
  0x2e   :  { %49 = vsyncpa [#allocation4], 1 }

</bundles_post_ra>
